<compile_context>
chip_gen: v6e
topology: v6e:2x2x1
jax: 0.10.0
libtpu: 0.0.40
codegen_flags: <defaults>
</compile_context>

<pallas_src>
import functools

import jax
import jax.numpy as jnp
from jax.experimental import pallas as pl
from jax.experimental.pallas import tpu as pltpu

# Plain Python float only — a jnp scalar at module scope would be captured as a
# kernel constant and rejected by pallas_call.
_NEG_BIG = -1e30


def _round_up(v, m):
    return (v + m - 1) // m * m


def _pad2(a, rows, cols):
    return jnp.pad(a, ((0, rows - a.shape[0]), (0, cols - a.shape[1])))


def _vmem_limit_bytes():
    """Generation-aware scoped-VMEM budget (~85% of physical capacity)."""
    cap = 128 * 1024 * 1024
    try:
        info = pltpu.get_tpu_info()
        cap = getattr(info, "vmem_capacity_bytes", None) or cap
    except Exception:
        pass
    return int(cap * 0.85)


_VMEM_LIMIT = _vmem_limit_bytes()


# ---------------------------------------------------------------------------
# Kernel 1: fused linear transform + attention coefficients (one bf16 matmul)
# ---------------------------------------------------------------------------
def _linear_kernel(x_ref, w_ref, hx_ref, attc_ref, *, hc_pad):
    """x tile @ [W | W·att_src | W·att_dst]  (single dense MXU matmul).

    x_ref    : [T, Fp]          bf16
    w_ref    : [Fp, HCp + 128]  bf16 (resident; att projections folded in)
    hx_ref   : [T, HCp]         bf16 (out) feature transform
    attc_ref : [T, 128]         f32  (out) cols 0..H = alpha_src, H..2H = alpha_dst
    """
    full = jnp.dot(x_ref[...], w_ref[...], preferred_element_type=jnp.float32)
    hx_ref[...] = full[:, :hc_pad].astype(hx_ref.dtype)     # lane-boundary slice
    attc_ref[...] = full[:, hc_pad:]


# ---------------------------------------------------------------------------
# Kernel 2: masked softmax + aggregation for one dst-row tile
# ---------------------------------------------------------------------------
def _attn_kernel(asrc_t_ref, adst_ref, adjb_ref, hx_ref, bias_ref, out_ref, *,
                 heads, out_ch, apply_elu, fuse_log_softmax, out_valid):
    """asrc_t: [H, Np] f32 (resident, src on lanes), adst: [Td, H] f32,
    adjb: [Td, Np] bf16 additive mask bias (0 = edge, -1e30 = no edge),
    hx: [Np, HCp] bf16 (resident), bias: [1, HCp] f32, out: [Td, HCp]."""
    td, hc_pad = out_ref.shape
    adj_bias = adjb_ref[...].astype(jnp.float32)    # cast once, reused per head
    a_src = asrc_t_ref[...]                         # [H, Np]
    a_dst = adst_ref[...]                           # [Td, H]
    hx = hx_ref[...]                                # [Np, HCp] bf16
    col = jax.lax.broadcasted_iota(jnp.int32, (1, hc_pad), 1)

    agg = jnp.zeros((td, hc_pad), jnp.float32)
    for h in range(heads):                 # static loop: one [Td, Np] slab live
        e = a_src[h:h + 1, :] + a_dst[:, h:h + 1]           # [Td, Np]
        e = jnp.maximum(e, 0.2 * e) + adj_bias               # LeakyReLU + mask
        m = jnp.max(e, axis=-1, keepdims=True)
        p = jnp.exp(e - m)                   # masked entries underflow to 0
        s = jnp.sum(p, axis=-1, keepdims=True)               # >= 1 (self-loops)
        # bf16 MXU matmul with f32 accumulation, then exact normalization.
        full = jnp.dot(p.astype(jnp.bfloat16), hx,
                       preferred_element_type=jnp.float32)   # [Td, HCp]
        full = full / s
        if heads == 1:
            agg = full                       # hx pad columns are zero
        else:
            sel = (col >= h * out_ch) & (col < (h + 1) * out_ch)
            agg = jnp.where(sel, full, agg)  # head h's lane group
    res = agg + bias_ref[...]
    if apply_elu:
        # ELU(alpha=1); min() keeps the dead branch finite.
        res = jnp.where(res > 0, res, jnp.exp(jnp.minimum(res, 0.0)) - 1.0)
    if fuse_log_softmax:
        valid = col < out_valid
        rm = jnp.where(valid, res, _NEG_BIG)
        m2 = jnp.max(rm, axis=-1, keepdims=True)
        lse = jnp.log(jnp.sum(jnp.exp(rm - m2), axis=-1, keepdims=True))
        res = jnp.where(valid, res - m2 - lse, 0.0)
    out_ref[...] = res.astype(out_ref.dtype)            # single lane-dense store


# ---------------------------------------------------------------------------
# JAX wrappers
# ---------------------------------------------------------------------------
def _expand_att(att):
    """[H, C] -> [H*C, H] block-diagonal so hx @ result == per-head <hx_h, att_h>."""
    h, c = att.shape
    eye = jnp.eye(h, dtype=att.dtype)
    return (att[:, :, None] * eye[:, None, :]).reshape(h * c, h)


def _linear_pass(x_p, w_cat, hc_pad, tile_n):
    n_pad, f_pad = x_p.shape
    wc = w_cat.shape[1]
    kernel = functools.partial(_linear_kernel, hc_pad=hc_pad)
    return pl.pallas_call(
        kernel,
        grid=(n_pad // tile_n,),
        in_specs=[
            pl.BlockSpec((tile_n, f_pad), lambda i: (i, 0)),
            pl.BlockSpec((f_pad, wc), lambda i: (0, 0)),        # W_cat (resident)
        ],
        out_specs=[
            pl.BlockSpec((tile_n, hc_pad), lambda i: (i, 0)),
            pl.BlockSpec((tile_n, 128), lambda i: (i, 0)),
        ],
        out_shape=[
            jax.ShapeDtypeStruct((n_pad, hc_pad), jnp.bfloat16),
            jax.ShapeDtypeStruct((n_pad, 128), jnp.float32),
        ],
        compiler_params=pltpu.CompilerParams(
            dimension_semantics=("parallel",),
            vmem_limit_bytes=_VMEM_LIMIT),
    )(x_p, w_cat)


def _attn_pass(asrc_t, adst, adjb_p, hx, bias_p, *, heads, out_ch, apply_elu,
               fuse_log_softmax, out_valid, out_dtype, tile_nd):
    n_pad = adjb_p.shape[0]
    hc_pad = hx.shape[1]
    kernel = functools.partial(
        _attn_kernel, heads=heads, out_ch=out_ch, apply_elu=apply_elu,
        fuse_log_softmax=fuse_log_softmax, out_valid=out_valid)
    return pl.pallas_call(
        kernel,
        grid=(n_pad // tile_nd,),
        in_specs=[
            pl.BlockSpec((heads, n_pad), lambda i: (0, 0)),    # alpha_src^T (resident)
            pl.BlockSpec((tile_nd, heads), lambda i: (i, 0)),  # alpha_dst tile
            pl.BlockSpec((tile_nd, n_pad), lambda i: (i, 0)),  # adj-bias slab (bf16 stream)
            pl.BlockSpec((n_pad, hc_pad), lambda i: (0, 0)),   # hx bf16 (resident)
            pl.BlockSpec((1, hc_pad), lambda i: (0, 0)),       # bias
        ],
        out_specs=pl.BlockSpec((tile_nd, hc_pad), lambda i: (i, 0)),
        out_shape=jax.ShapeDtypeStruct((n_pad, hc_pad), out_dtype),
        compiler_params=pltpu.CompilerParams(
            dimension_semantics=("parallel",),     # megacore shard on v7x
            vmem_limit_bytes=_VMEM_LIMIT),
    )(asrc_t, adst, adjb_p, hx, bias_p)


def gat_layer(x_p, adjb_p, w, att_src, att_dst, bias, *, heads, out_ch,
              apply_elu, fuse_log_softmax=False, out_dtype=jnp.float32,
              tile_n=512, tile_nd=256):
    """One dense GATConv layer on padded inputs; returns [N_pad, HC_pad]."""
    n_pad, f_pad = x_p.shape
    hc = heads * out_ch
    hc_pad = _round_up(hc, 128)
    f_in = w.shape[0]
    # Fold attention projections into the weight matrix (single dense matmul).
    w_att = jnp.concatenate(
        [w @ _expand_att(att_src), w @ _expand_att(att_dst)], axis=1)  # [F_in, 2H]
    w_cat = jnp.concatenate(
        [_pad2(w, f_in, hc_pad), _pad2(w_att, f_in, 128)], axis=1)
    w_cat = _pad2(w_cat, f_pad, hc_pad + 128).astype(jnp.bfloat16)
    b_p = jnp.pad(bias, (0, hc_pad - hc)).reshape(1, -1).astype(jnp.float32)

    hx, attc = _linear_pass(x_p, w_cat, hc_pad, tile_n)
    asrc_t = attc[:, :heads].T                # tiny XLA transpose -> [H, N_pad]
    adst = attc[:, heads:2 * heads]           # [N_pad, H]
    return _attn_pass(asrc_t, adst, adjb_p, hx, b_p, heads=heads, out_ch=out_ch,
                      apply_elu=apply_elu, fuse_log_softmax=fuse_log_softmax,
                      out_valid=hc, out_dtype=out_dtype, tile_nd=tile_nd)


def gatnet_forward(params, x, adj, *, tile_n=512, tile_nd=256):
    """Mirrors GATNet.forward in eval mode (dropout = identity)."""
    assert tile_n % tile_nd == 0 and tile_nd % 128 == 0
    n, f_in = x.shape
    heads, hidden, classes = params["heads"], params["hidden"], params["classes"]

    n_pad = _round_up(max(n, tile_n), tile_n)
    f_pad = _round_up(f_in, 128)
    x_p = _pad2(x.astype(jnp.float32), n_pad, f_pad).astype(jnp.bfloat16)
    # Additive mask bias: 0 where edge, -1e30 where no edge (exact 0 for edges,
    # -1e30 representable in bf16 and still underflows to 0 after exp).
    adjb_p = ((_pad2(adj.astype(jnp.float32), n_pad, n_pad) - 1.0) * 1e30
              ).astype(jnp.bfloat16)

    h1 = gat_layer(x_p, adjb_p, params["w1"], params["att_src1"],
                   params["att_dst1"], params["b1"], heads=heads,
                   out_ch=hidden, apply_elu=True, out_dtype=jnp.bfloat16,
                   tile_n=tile_n, tile_nd=tile_nd)                  # conv1 + ELU
    out_p = gat_layer(h1, adjb_p, params["w2"], params["att_src2"],
                      params["att_dst2"], params["b2"], heads=1,
                      out_ch=classes, apply_elu=False, fuse_log_softmax=True,
                      out_dtype=jnp.float32, tile_n=tile_n,
                      tile_nd=tile_nd)                   # conv2 + log_softmax
    out = out_p[:n, :classes]
    # Timing accumulators from the PyTorch module are not meaningful here.
    return out, 0.0, 0.0, 0.0, 0.0


# ---------------------------------------------------------------------------
# Pure-JAX f32 reference (for correctness check only)
# ---------------------------------------------------------------------------
def _gat_layer_ref(x, w, att_src, att_dst, adj, bias, heads, out_ch, apply_elu):
    hx = x @ w
    hx3 = hx.reshape(-1, heads, out_ch)
    a_s = jnp.einsum("nhc,hc->nh", hx3, att_src)
    a_d = jnp.einsum("nhc,hc->nh", hx3, att_dst)
    e = a_s[None, :, :] + a_d[:, None, :]                  # [Ndst, Nsrc, H]
    e = jnp.where(e > 0, e, 0.2 * e)
    mask = adj[:, :, None] > 0
    e = jnp.where(mask, e, -1e30)
    p = jax.nn.softmax(e, axis=1)
    p = jnp.where(mask, p, 0.0)
    out = jnp.einsum("ijh,jhc->ihc", p, hx3).reshape(-1, heads * out_ch) + bias
    return jax.nn.elu(out) if apply_elu else out


def _forward_ref(params, x, adj):
    h = _gat_layer_ref(x, params["w1"], params["att_src1"], params["att_dst1"],
                       adj, params["b1"], params["heads"], params["hidden"], True)
    h = _gat_layer_ref(h, params["w2"], params["att_src2"], params["att_dst2"],
                       adj, params["b2"], 1, params["classes"], False)
    return jax.nn.log_softmax(h, axis=1)


# ---------------------------------------------------------------------------
if __name__ == "__main__":
    # Small synthetic "Cora-like" graph (multi-tile in the attention pass).
    N, F_IN, HIDDEN, HEADS, CLASSES, E = 200, 16, 8, 8, 7, 600

    key = jax.random.PRNGKey(0)
    keys = jax.random.split(key, 10)

    x = jax.random.normal(keys[0], (N, F_IN), dtype=jnp.float32)
    src = jax.random.randint(keys[1], (E,), 0, N)
    dst = jax.random.randint(keys[2], (E,), 0, N)

    # Dense adjacency adj[dst, src], with self-loops (PyG default).
    adj = jnp.zeros((N, N), jnp.float32).at[dst, src].set(1.0)
    adj = jnp.maximum(adj, jnp.eye(N, dtype=jnp.float32))

    params = {
        "heads": HEADS, "hidden": HIDDEN, "classes": CLASSES,
        "w1": jax.random.normal(keys[3], (F_IN, HEADS * HIDDEN)) / jnp.sqrt(F_IN),
        "att_src1": 0.1 * jax.random.normal(keys[4], (HEADS, HIDDEN)),
        "att_dst1": 0.1 * jax.random.normal(keys[5], (HEADS, HIDDEN)),
        "b1": jnp.zeros((HEADS * HIDDEN,), jnp.float32),
        "w2": jax.random.normal(keys[6], (HEADS * HIDDEN, CLASSES))
              / jnp.sqrt(HEADS * HIDDEN),
        "att_src2": 0.1 * jax.random.normal(keys[7], (1, CLASSES)),
        "att_dst2": 0.1 * jax.random.normal(keys[8], (1, CLASSES)),
        "b2": jnp.zeros((CLASSES,), jnp.float32),
    }
    params = {k: (v if isinstance(v, int) else v.astype(jnp.float32))
              for k, v in params.items()}

    out, *_times = gatnet_forward(params, x, adj)
    out = jax.block_until_ready(out)

    ref = _forward_ref(params, x, adj)
    assert out.shape == (N, CLASSES)
    # Tolerance accounts for bf16 MXU operands (f32 accumulation) through two
    # layers; widened deliberately per the performance review.
    max_err = float(jnp.max(jnp.abs(out - ref)))
    assert jnp.allclose(out, ref, atol=5e-2, rtol=5e-2), \
        f"mismatch vs reference (max abs err {max_err})"

    print("KERNEL_OK")
</pallas_src>

<mosaic_0001>
module attributes {stable_mosaic.version = 11 : i64} {
  func.func @_linear_kernel(%arg0: i32, %arg1: memref<512x128xbf16, #tpu.memory_space<vmem>>, %arg2: memref<128x256xbf16, #tpu.memory_space<vmem>>, %arg3: memref<512x128xbf16, #tpu.memory_space<vmem>>, %arg4: memref<512x128xf32, #tpu.memory_space<vmem>>) attributes {dimension_semantics = [#tpu.dimension_semantics<parallel>], iteration_bounds = array<i64: 1>, scalar_prefetch = 0 : i64, scratch_operands = 0 : i64, tpu.core_type = #tpu.core_type<tc>, window_params = [{transform_indices = @transform_0, window_bounds = array<i64: 512, 128>}, {pipeline_mode = #tpu.pipeline_mode<synchronous>, transform_indices = @transform_1, window_bounds = array<i64: 128, 256>}, {transform_indices = @transform_2, window_bounds = array<i64: 512, 128>}, {transform_indices = @transform_3, window_bounds = array<i64: 512, 128>}]} {
    %c0 = arith.constant 0 : index
    %c0_0 = arith.constant 0 : index
    %0 = vector.load %arg1[%c0, %c0_0] : memref<512x128xbf16, #tpu.memory_space<vmem>>, vector<512x128xbf16>
    %c0_1 = arith.constant 0 : index
    %c0_2 = arith.constant 0 : index
    %1 = vector.load %arg2[%c0_1, %c0_2] : memref<128x256xbf16, #tpu.memory_space<vmem>>, vector<128x256xbf16>
    %cst = arith.constant dense<0.000000e+00> : vector<512x256xf32>
    %2 = tpu.matmul %0, %1, %cst {dimension_numbers = #tpu.dot_dimension_numbers<[1], [0], [0], [1], [0, 0, 1, 1], [], []>} : vector<512x128xbf16>, vector<128x256xbf16>, vector<512x256xf32> -> vector<512x256xf32>
    %3 = vector.extract_strided_slice %2 {offsets = [0, 0], sizes = [512, 128], strides = [1, 1]} : vector<512x256xf32> to vector<512x128xf32>
    %4 = arith.truncf %3 : vector<512x128xf32> to vector<512x128xbf16>
    %c0_3 = arith.constant 0 : index
    %c0_4 = arith.constant 0 : index
    %5 = vector.load %arg3[%c0_3, %c0_4] : memref<512x128xbf16, #tpu.memory_space<vmem>>, vector<512x128xbf16>
    tpu.vector_store %arg3[%c0_3, %c0_4], %4 {strides = array<i32>} : memref<512x128xbf16, #tpu.memory_space<vmem>>, vector<512x128xbf16>,
    %6 = vector.extract_strided_slice %2 {offsets = [0, 128], sizes = [512, 128], strides = [1, 1]} : vector<512x256xf32> to vector<512x128xf32>
    %c0_5 = arith.constant 0 : index
    %c0_6 = arith.constant 0 : index
    %7 = vector.load %arg4[%c0_5, %c0_6] : memref<512x128xf32, #tpu.memory_space<vmem>>, vector<512x128xf32>
    tpu.vector_store %arg4[%c0_5, %c0_6], %6 {strides = array<i32>} : memref<512x128xf32, #tpu.memory_space<vmem>>, vector<512x128xf32>,
    return
  }
  func.func @transform_0(%arg0: i32) -> (i32, i32) {
    %c0_i32 = arith.constant 0 : i32
    %c0_i32_0 = arith.constant 0 : i32
    return %arg0, %c0_i32 : i32, i32
  }
  func.func @transform_1(%arg0: i32) -> (i32, i32) {
    %c0_i32 = arith.constant 0 : i32
    %c0_i32_0 = arith.constant 0 : i32
    %c0_i32_1 = arith.constant 0 : i32
    return %c0_i32, %c0_i32_0 : i32, i32
  }
  func.func @transform_2(%arg0: i32) -> (i32, i32) {
    %c0_i32 = arith.constant 0 : i32
    %c0_i32_0 = arith.constant 0 : i32
    return %arg0, %c0_i32 : i32, i32
  }
  func.func @transform_3(%arg0: i32) -> (i32, i32) {
    %c0_i32 = arith.constant 0 : i32
    %c0_i32_0 = arith.constant 0 : i32
    return %arg0, %c0_i32 : i32, i32
  }
}

</mosaic_0001>

<bundles_post_ra>
// kernel: tpu_custom_call.1
= control target key start
LH: loop header
LB: loop body
LE: loop exit
PB: predicated region body
PF: predicated region fallthrough
CT: control target
= control target key end

     0   :  { %9 = vsyncpa [#allocation3], 0  ;;  %s1788_s0 = inlined_call_operand.hbm [shape: bf16[512,128], index: 0, kind: input, shape index: {}]   ;;  %s1789_s1 = inlined_call_operand.hbm [shape: bf16[128,256], index: 1, kind: input, shape index: {}]   ;;  %s1790_s2 = inlined_call_operand.hbm [shape: bf16[512,128], index: 2, kind: output, shape index: {0}]   ;;  %s1791_s3 = inlined_call_operand.hbm [shape: f32[512,128], index: 3, kind: output, shape index: {1}]  }
   0x1   :  { %10 = vsyncpa [#allocation6], 0 }
   0x2   :  { %11 = vsyncpa [#allocation4], 0 }
   0x3   :  { %12 = vsyncpa [#allocation9], 0  ;;  %s1703_s12 = smov [#allocation2]  }
   0x4   :  { %s18_s13 = sshll.u32 %s1703_s12, 4  ;;  %s19_s13 = int_to_ptr.vmem [resolvable:$true] %s18_s13 }
   0x5   :  { %s1623_s14 = scalar_lea.vmem %s19_s13, 4096  ;;  %p1628_p1 = scmp.lt.s32.totalorder %s19_s13, %s19_s13 }
   0x6   :  { %p1624_p0 = scmp.ne.s32.totalorder %s19_s13, %s1623_s14  ;;  %p1629_p2 = scmp.lt.s32.totalorder %s1623_s14, %s1623_s14 }
   0x8   :  { %p1630_p3 = por %p1629_p2, %p1628_p1 }
   0xa   :  { %p1631_p4 = pnand %p1630_p3, %p1624_p0 }
   0xc   :  { %1634 = shalt.err (!%p1631_p4)
}
   0xd   :  { %s1704_s15 = smov 64   ;;  %s1705_s16 = smov 4  }
   0xe   :  { %24 = dma.hbm_to_vmem [thread:$0]  %s1788_s0, 4096, %s19_s13, [#allocation3], %s1704_s15, %s1704_s15, %s1705_s16  }
   0xf   :  { %s1706_s19 = smov [#allocation5]  }
  0x10   :  { %s30_s20 = sshll.u32 %s1706_s19, 4  ;;  %s31_s20 = int_to_ptr.vmem [resolvable:$true] %s30_s20 }
  0x11   :  { %s1643_s21 = scalar_lea.vmem %s31_s20, 2048  ;;  %p1648_p6 = scmp.lt.s32.totalorder %s31_s20, %s31_s20 }
  0x12   :  { %p1644_p5 = scmp.ne.s32.totalorder %s31_s20, %s1643_s21  ;;  %p1649_p7 = scmp.lt.s32.totalorder %s1643_s21, %s1643_s21 }
  0x14   :  { %p1650_p8 = por %p1649_p7, %p1648_p6 }
  0x16   :  { %p1651_p9 = pnand %p1650_p8, %p1644_p5 }
  0x18   :  { %1654 = shalt.err (!%p1651_p9)
}
  0x19   :  { %s1707_s22 = smov 128   ;;  %s1708_s23 = smov 8  }
  0x1a   :  { %36 = dma.hbm_to_vmem [thread:$0]  %s1789_s1, 2048, %s31_s20, [#allocation6], %s1707_s22, %s1707_s22, %s1708_s23  }
  0x1b   :  { %1695 = dma.done.wait [#allocation3], 4096  }
  0x1c   :  { %1696 = vsyncadd [#allocation3], 4294963200 }
  0x1d   :  { %1697 = dma.done.wait [#allocation6], 2048  }
  0x1e   :  { %1698 = vsyncadd [#allocation6], 4294965248  ;;  %v1709_v0 = vmov 0   ;;  %v1559_v1 = vld [vmem:[#allocation5 + $0x74] ss:$8 sps:$4 sm:$0xff]   ;;  %v1583_v17 = vld [vmem:[#allocation2] sm:$0xff]  }
  0x1f   :  { %428 = vmatprep.mubr.bf16.mxu0 %v1709_v0  ;;  %588 = vmatprep.mubr.bf16.mxu1 %v1709_v0  ;;  %v1561_v2 = vld [vmem:[#allocation5 + $0x70] ss:$8 sps:$4 sm:$0xff]   ;;  %v1562_v3 = vld [vmem:[#allocation5 + $0x64] ss:$8 sps:$4 sm:$0xff]   ;;  %v1564_v4 = vld [vmem:[#allocation5 + $0x60] ss:$8 sps:$4 sm:$0xff]  }
  0x20   :  { %396 = vmatprep.subr.bf16.mxu0 %v1559_v1  ;;  %1534 = vmatprep.subr.bf16.mxu1 %v1559_v1  ;;  %v1565_v5 = vld [vmem:[#allocation5 + $0x54] ss:$8 sps:$4 sm:$0xff]   ;;  %v1567_v6 = vld [vmem:[#allocation5 + $0x50] ss:$8 sps:$4 sm:$0xff]   ;;  %v1568_v7 = vld [vmem:[#allocation5 + $0x44] ss:$8 sps:$4 sm:$0xff]  }
  0x21   :  { %397 = vmatpush1.bf16.msra.mxu0 %v1561_v2  ;;  %1542 = vmatpush1.bf16.msra.mxu1 %v1561_v2  ;;  %v1570_v8 = vld [vmem:[#allocation5 + $0x40] ss:$8 sps:$4 sm:$0xff]   ;;  %v1571_v9 = vld [vmem:[#allocation5 + $0x34] ss:$8 sps:$4 sm:$0xff]   ;;  %v1573_v10 = vld [vmem:[#allocation5 + $0x30] ss:$8 sps:$4 sm:$0xff]  }
  0x22   :  { %398 = vmatprep.subr.bf16.mxu0 %v1562_v3  ;;  %1535 = vmatprep.subr.bf16.mxu1 %v1562_v3  ;;  %v1574_v11 = vld [vmem:[#allocation5 + $0x24] ss:$8 sps:$4 sm:$0xff]   ;;  %v1576_v12 = vld [vmem:[#allocation5 + $0x20] ss:$8 sps:$4 sm:$0xff]   ;;  %v1577_v13 = vld [vmem:[#allocation5 + $0x14] ss:$8 sps:$4 sm:$0xff]  }
  0x23   :  { %v1579_v14 = vld [vmem:[#allocation5 + $0x10] ss:$8 sps:$4 sm:$0xff]   ;;  %v1580_v15 = vld [vmem:[#allocation5 + $0x4] ss:$8 sps:$4 sm:$0xff]   ;;  %v1582_v16 = vld [vmem:[#allocation5] ss:$8 sps:$4 sm:$0xff]  }
  0x24   :  { %v1584_v18 = vld [vmem:[#allocation2 + $0x80] sm:$0xff]   ;;  %v1585_v19 = vld [vmem:[#allocation2 + $0x8] sm:$0xff]   ;;  %v1587_v21 = vld [vmem:[#allocation2 + $0x10] sm:$0xff]   ;;  %s1710_s0 = smov [#allocation7]   ;;  %s1711_s26 = smov [#allocation8]  }
  0x25   :  { %399 = vmatpush1.bf16.msra.mxu0 %v1564_v4  ;;  %1543 = vmatpush1.bf16.msra.mxu1 %v1564_v4  ;;  %v1586_v20 = vld [vmem:[#allocation2 + $0x88] sm:$0xff]   ;;  %v1588_v22 = vld [vmem:[#allocation2 + $0x90] sm:$0xff]   ;;  %v1589_v23 = vld [vmem:[#allocation2 + $0x18] sm:$0xff]   ;;  %s1138_s1 = sshll.u32 %s1710_s0, 4  ;;  %s1150_s27 = sshll.u32 %s1711_s26, 4  ;;  %s1139_s1 = int_to_ptr.vmem [resolvable:$true] %s1138_s1  ;;  %s1151_s27 = int_to_ptr.vmem [resolvable:$true] %s1150_s27 }
  0x26   :  { %400 = vmatprep.subr.bf16.mxu0 %v1565_v5  ;;  %1536 = vmatprep.subr.bf16.mxu1 %v1565_v5  ;;  %v1590_v24 = vld [vmem:[#allocation2 + $0x98] sm:$0xff]   ;;  %v1591_v25 = vld [vmem:[#allocation2 + $0x20] sm:$0xff]   ;;  %v1593_v27 = vld [vmem:[#allocation2 + $0x28] sm:$0xff]   ;;  %s1655_s28 = scalar_lea.vmem %s1139_s1, 4096  ;;  %p1660_p11 = scmp.lt.s32.totalorder %s1139_s1, %s1139_s1 }
  0x27   :  { %v1592_v26 = vld [vmem:[#allocation2 + $0xa0] sm:$0xff]   ;;  %v1594_v28 = vld [vmem:[#allocation2 + $0xa8] sm:$0xff]   ;;  %v1595_v29 = vld [vmem:[#allocation2 + $0x30] sm:$0xff]   ;;  %p1656_p10 = scmp.ne.s32.totalorder %s1139_s1, %s1655_s28  ;;  %p1661_p12 = scmp.lt.s32.totalorder %s1655_s28, %s1655_s28 }
  0x28   :  { %v1596_v30 = vld [vmem:[#allocation2 + $0xb0] sm:$0xff]   ;;  %v1597_v31 = vld [vmem:[#allocation2 + $0x38] sm:$0xff]   ;;  %v1599_v33 = vld [vmem:[#allocation2 + $0x40] sm:$0xff]  }
  0x29   :  { %401 = vmatpush1.bf16.msra.mxu0 %v1567_v6  ;;  %1544 = vmatpush1.bf16.msra.mxu1 %v1567_v6  ;;  %v1598_v32 = vld [vmem:[#allocation2 + $0xb8] sm:$0xff]   ;;  %v1600_v34 = vld [vmem:[#allocation2 + $0xc0] sm:$0xff]   ;;  %v1601_v35 = vld [vmem:[#allocation2 + $0x48] sm:$0xff]   ;;  %p1662_p13 = por %p1661_p12, %p1660_p11 }
  0x2a   :  { %402 = vmatprep.subr.bf16.mxu0 %v1568_v7  ;;  %1537 = vmatprep.subr.bf16.mxu1 %v1568_v7  ;;  %v1602_v36 = vld [vmem:[#allocation2 + $0xc8] sm:$0xff]   ;;  %v1603_v37 = vld [vmem:[#allocation2 + $0x50] sm:$0xff]   ;;  %v1605_v39 = vld [vmem:[#allocation2 + $0x58] sm:$0xff]  }
  0x2b   :  { %v1604_v38 = vld [vmem:[#allocation2 + $0xd0] sm:$0xff]   ;;  %v1606_v40 = vld [vmem:[#allocation2 + $0xd8] sm:$0xff]   ;;  %v1607_v41 = vld [vmem:[#allocation2 + $0x60] sm:$0xff]   ;;  %p1663_p0 = pnand %p1662_p13, %p1656_p10 }
  0x2c   :  { %v1608_v42 = vld [vmem:[#allocation2 + $0xe0] sm:$0xff]   ;;  %v1609_v43 = vld [vmem:[#allocation2 + $0x68] sm:$0xff]   ;;  %v1611_v45 = vld [vmem:[#allocation2 + $0x70] sm:$0xff]  }
  0x2d   :  { %403 = vmatpush1.bf16.msra.mxu0 %v1570_v8  ;;  %1545 = vmatpush1.bf16.msra.mxu1 %v1570_v8  ;;  %v1610_v44 = vld [vmem:[#allocation2 + $0xe8] sm:$0xff]   ;;  %v1612_v46 = vld [vmem:[#allocation2 + $0xf0] sm:$0xff]   ;;  %v1613_v47 = vld [vmem:[#allocation2 + $0x78] sm:$0xff]  }
  0x2e   :  { %404 = vmatprep.subr.bf16.mxu0 %v1571_v9  ;;  %1538 = vmatprep.subr.bf16.mxu1 %v1571_v9  ;;  %v1614_v48 = vld [vmem:[#allocation2 + $0xf8] sm:$0xff]  }
  0x31   :  { %405 = vmatpush1.bf16.msra.mxu0 %v1573_v10  ;;  %1546 = vmatpush1.bf16.msra.mxu1 %v1573_v10 }
  0x32   :  { %406 = vmatprep.subr.bf16.mxu0 %v1574_v11  ;;  %1539 = vmatprep.subr.bf16.mxu1 %v1574_v11 }
  0x35   :  { %407 = vmatpush1.bf16.msra.mxu0 %v1576_v12  ;;  %1547 = vmatpush1.bf16.msra.mxu1 %v1576_v12 }
  0x36   :  { %408 = vmatprep.subr.bf16.mxu0 %v1577_v13  ;;  %1540 = vmatprep.subr.bf16.mxu1 %v1577_v13 }
  0x39   :  { %409 = vmatpush1.bf16.msra.mxu0 %v1579_v14  ;;  %1548 = vmatpush1.bf16.msra.mxu1 %v1579_v14 }
  0x3a   :  { %410 = vmatprep.subr.bf16.mxu0 %v1580_v15  ;;  %1541 = vmatprep.subr.bf16.mxu1 %v1580_v15 }
  0x3d   :  { %411 = vmatpush1.bf16.msra.mxu0 %v1582_v16  ;;  %1549 = vmatpush1.bf16.msra.mxu1 %v1582_v16 }
  0x40   :  { %429 = vmatmul.mubr.bf16.vlgmr.msra.gmra.mxu0 %v1583_v17  ;;  %589 = vmatmul.mubr.bf16.vlgmr.msra.gmra.mxu1 %v1584_v18 }
  0x41   :  { %438 = vmatprep.mubr.bf16.mxu0 %v1709_v0  ;;  %598 = vmatprep.mubr.bf16.mxu1 %v1709_v0 }
  0x48   :  { %439 = vmatmul.mubr.bf16.gmra.mxu0 %v1585_v19  ;;  %599 = vmatmul.mubr.bf16.gmra.mxu1 %v1586_v20 }
  0x49   :  { %448 = vmatprep.mubr.bf16.mxu0 %v1709_v0  ;;  %608 = vmatprep.mubr.bf16.mxu1 %v1709_v0 }
  0x50   :  { %449 = vmatmul.mubr.bf16.gmra.mxu0 %v1587_v21  ;;  %609 = vmatmul.mubr.bf16.gmra.mxu1 %v1588_v22 }
  0x51   :  { %458 = vmatprep.mubr.bf16.mxu0 %v1709_v0  ;;  %618 = vmatprep.mubr.bf16.mxu1 %v1709_v0 }
  0x58   :  { %459 = vmatmul.mubr.bf16.gmra.mxu0 %v1589_v23  ;;  %619 = vmatmul.mubr.bf16.gmra.mxu1 %v1590_v24 }
  0x59   :  { %468 = vmatprep.mubr.bf16.mxu0 %v1709_v0  ;;  %628 = vmatprep.mubr.bf16.mxu1 %v1709_v0 }
  0x60   :  { %469 = vmatmul.mubr.bf16.gmra.mxu0 %v1591_v25  ;;  %629 = vmatmul.mubr.bf16.gmra.mxu1 %v1592_v26 }
  0x61   :  { %478 = vmatprep.mubr.bf16.mxu0 %v1709_v0  ;;  %638 = vmatprep.mubr.bf16.mxu1 %v1709_v0 }
  0x68   :  { %479 = vmatmul.mubr.bf16.gmra.mxu0 %v1593_v27  ;;  %639 = vmatmul.mubr.bf16.gmra.mxu1 %v1594_v28 }
  0x69   :  { %488 = vmatprep.mubr.bf16.mxu0 %v1709_v0  ;;  %648 = vmatprep.mubr.bf16.mxu1 %v1709_v0 }
  0x70   :  { %489 = vmatmul.mubr.bf16.gmra.mxu0 %v1595_v29  ;;  %649 = vmatmul.mubr.bf16.gmra.mxu1 %v1596_v30 }
  0x71   :  { %498 = vmatprep.mubr.bf16.mxu0 %v1709_v0  ;;  %658 = vmatprep.mubr.bf16.mxu1 %v1709_v0 }
  0x78   :  { %499 = vmatmul.mubr.bf16.gmra.mxu0 %v1597_v31  ;;  %659 = vmatmul.mubr.bf16.gmra.mxu1 %v1598_v32 }
  0x79   :  { %508 = vmatprep.mubr.bf16.mxu0 %v1709_v0  ;;  %668 = vmatprep.mubr.bf16.mxu1 %v1709_v0 }
  0x80   :  { %509 = vmatmul.mubr.bf16.gmra.mxu0 %v1599_v33  ;;  %669 = vmatmul.mubr.bf16.gmra.mxu1 %v1600_v34 }
  0x81   :  { %518 = vmatprep.mubr.bf16.mxu0 %v1709_v0  ;;  %678 = vmatprep.mubr.bf16.mxu1 %v1709_v0 }
  0x88   :  { %519 = vmatmul.mubr.bf16.gmra.mxu0 %v1601_v35  ;;  %679 = vmatmul.mubr.bf16.gmra.mxu1 %v1602_v36 }
  0x89   :  { %528 = vmatprep.mubr.bf16.mxu0 %v1709_v0  ;;  %688 = vmatprep.mubr.bf16.mxu1 %v1709_v0 }
  0x90   :  { %529 = vmatmul.mubr.bf16.gmra.mxu0 %v1603_v37  ;;  %689 = vmatmul.mubr.bf16.gmra.mxu1 %v1604_v38 }
  0x91   :  { %538 = vmatprep.mubr.bf16.mxu0 %v1709_v0  ;;  %698 = vmatprep.mubr.bf16.mxu1 %v1709_v0 }
  0x98   :  { %539 = vmatmul.mubr.bf16.gmra.mxu0 %v1605_v39  ;;  %699 = vmatmul.mubr.bf16.gmra.mxu1 %v1606_v40 }
  0x99   :  { %548 = vmatprep.mubr.bf16.mxu0 %v1709_v0  ;;  %708 = vmatprep.mubr.bf16.mxu1 %v1709_v0 }
  0xa0   :  { %549 = vmatmul.mubr.bf16.gmra.mxu0 %v1607_v41  ;;  %709 = vmatmul.mubr.bf16.gmra.mxu1 %v1608_v42 }
  0xa1   :  { %558 = vmatprep.mubr.bf16.mxu0 %v1709_v0  ;;  %718 = vmatprep.mubr.bf16.mxu1 %v1709_v0 }
  0xa8   :  { %559 = vmatmul.mubr.bf16.gmra.mxu0 %v1609_v43  ;;  %719 = vmatmul.mubr.bf16.gmra.mxu1 %v1610_v44 }
  0xa9   :  { %568 = vmatprep.mubr.bf16.mxu0 %v1709_v0  ;;  %728 = vmatprep.mubr.bf16.mxu1 %v1709_v0 }
  0xb0   :  { %569 = vmatmul.mubr.bf16.gmra.mxu0 %v1611_v45  ;;  %729 = vmatmul.mubr.bf16.gmra.mxu1 %v1612_v46 }
  0xb1   :  { %578 = vmatprep.mubr.bf16.mxu0 %v1709_v0  ;;  %738 = vmatprep.mubr.bf16.mxu1 %v1709_v0 }
  0xb8   :  { %579 = vmatmul.mubr.bf16.gmra.mxu0 %v1613_v47  ;;  %739 = vmatmul.mubr.bf16.gmra.mxu1 %v1614_v48 }
 0x100   :  { %v430_v49 = vpop.f32.mrf.mxu0  ;;  %v590_v50 = vpop.f32.mrf.mxu1 }
 0x102   :  { %v432_v51 = vpop.f32.mrf.mxu0  ;;  %v592_v52 = vpop.f32.mrf.mxu1 }
 0x103   :  { %1069 = vst [vmem:[#allocation8] sm:$0xff] %v432_v51  ;;  %1101 = vst [vmem:[#allocation8 + $0x100] sm:$0xff] %v592_v52 }
 0x104   :  { %v434_v53 = vpop.f32.mrf.mxu0  ;;  %v594_v54 = vpop.f32.mrf.mxu1 }
 0x105   :  { %v1346_v55 = vpack.c.bf16 %v434_v53, %v430_v49  ;;  %v1426_v56 = vpack.c.bf16 %v594_v54, %v590_v50 }
 0x106   :  { %v436_v57 = vpop.f32.mrf.mxu0  ;;  %v596_v58 = vpop.f32.mrf.mxu1 }
 0x107   :  { %1347 = vst [vmem:[#allocation7] sm:$0xff] %v1346_v55   ;;  %1518 = vst [vmem:[#allocation7 + $0x80] sm:$0xff] %v1426_v56  }
 0x108   :  { %1070 = vst [vmem:[#allocation8 + $0x8] sm:$0xff] %v436_v57  ;;  %1102 = vst [vmem:[#allocation8 + $0x108] sm:$0xff] %v596_v58  ;;  %v440_v59 = vpop.f32.mrf.mxu0  ;;  %v600_v60 = vpop.f32.mrf.mxu1 }
 0x10a   :  { %v442_v61 = vpop.f32.mrf.mxu0  ;;  %v602_v62 = vpop.f32.mrf.mxu1 }
 0x10b   :  { %1071 = vst [vmem:[#allocation8 + $0x10] sm:$0xff] %v442_v61  ;;  %1103 = vst [vmem:[#allocation8 + $0x110] sm:$0xff] %v602_v62 }
 0x10c   :  { %v444_v63 = vpop.f32.mrf.mxu0  ;;  %v604_v0 = vpop.f32.mrf.mxu1 }
 0x10d   :  { %v1351_v1 = vpack.c.bf16 %v444_v63, %v440_v59  ;;  %v1431_v2 = vpack.c.bf16 %v604_v0, %v600_v60 }
 0x10e   :  { %v446_v3 = vpop.f32.mrf.mxu0  ;;  %v606_v4 = vpop.f32.mrf.mxu1 }
 0x10f   :  { %1503 = vst [vmem:[#allocation7 + $0x8] sm:$0xff] %v1351_v1   ;;  %1519 = vst [vmem:[#allocation7 + $0x88] sm:$0xff] %v1431_v2  }
 0x110   :  { %1072 = vst [vmem:[#allocation8 + $0x18] sm:$0xff] %v446_v3  ;;  %1104 = vst [vmem:[#allocation8 + $0x118] sm:$0xff] %v606_v4  ;;  %v450_v5 = vpop.f32.mrf.mxu0  ;;  %v610_v6 = vpop.f32.mrf.mxu1 }
 0x112   :  { %v452_v7 = vpop.f32.mrf.mxu0  ;;  %v612_v8 = vpop.f32.mrf.mxu1 }
 0x113   :  { %1073 = vst [vmem:[#allocation8 + $0x20] sm:$0xff] %v452_v7  ;;  %1105 = vst [vmem:[#allocation8 + $0x120] sm:$0xff] %v612_v8 }
 0x114   :  { %v454_v9 = vpop.f32.mrf.mxu0  ;;  %v614_v10 = vpop.f32.mrf.mxu1 }
 0x115   :  { %v1356_v11 = vpack.c.bf16 %v454_v9, %v450_v5  ;;  %v1436_v12 = vpack.c.bf16 %v614_v10, %v610_v6 }
 0x116   :  { %v456_v13 = vpop.f32.mrf.mxu0  ;;  %v616_v14 = vpop.f32.mrf.mxu1 }
 0x117   :  { %1504 = vst [vmem:[#allocation7 + $0x10] sm:$0xff] %v1356_v11   ;;  %1520 = vst [vmem:[#allocation7 + $0x90] sm:$0xff] %v1436_v12  }
 0x118   :  { %1074 = vst [vmem:[#allocation8 + $0x28] sm:$0xff] %v456_v13  ;;  %1106 = vst [vmem:[#allocation8 + $0x128] sm:$0xff] %v616_v14  ;;  %v460_v15 = vpop.f32.mrf.mxu0  ;;  %v620_v16 = vpop.f32.mrf.mxu1 }
 0x11a   :  { %v462_v17 = vpop.f32.mrf.mxu0  ;;  %v622_v18 = vpop.f32.mrf.mxu1 }
 0x11b   :  { %1075 = vst [vmem:[#allocation8 + $0x30] sm:$0xff] %v462_v17  ;;  %1107 = vst [vmem:[#allocation8 + $0x130] sm:$0xff] %v622_v18 }
 0x11c   :  { %v464_v19 = vpop.f32.mrf.mxu0  ;;  %v624_v20 = vpop.f32.mrf.mxu1 }
 0x11d   :  { %v1361_v21 = vpack.c.bf16 %v464_v19, %v460_v15  ;;  %v1441_v22 = vpack.c.bf16 %v624_v20, %v620_v16 }
 0x11e   :  { %v466_v23 = vpop.f32.mrf.mxu0  ;;  %v626_v24 = vpop.f32.mrf.mxu1 }
 0x11f   :  { %1505 = vst [vmem:[#allocation7 + $0x18] sm:$0xff] %v1361_v21   ;;  %1521 = vst [vmem:[#allocation7 + $0x98] sm:$0xff] %v1441_v22  }
 0x120   :  { %1076 = vst [vmem:[#allocation8 + $0x38] sm:$0xff] %v466_v23  ;;  %1108 = vst [vmem:[#allocation8 + $0x138] sm:$0xff] %v626_v24  ;;  %v470_v25 = vpop.f32.mrf.mxu0  ;;  %v630_v26 = vpop.f32.mrf.mxu1 }
 0x122   :  { %v472_v27 = vpop.f32.mrf.mxu0  ;;  %v632_v28 = vpop.f32.mrf.mxu1 }
 0x123   :  { %1077 = vst [vmem:[#allocation8 + $0x40] sm:$0xff] %v472_v27  ;;  %1109 = vst [vmem:[#allocation8 + $0x140] sm:$0xff] %v632_v28 }
 0x124   :  { %v474_v29 = vpop.f32.mrf.mxu0  ;;  %v634_v30 = vpop.f32.mrf.mxu1 }
 0x125   :  { %v1366_v31 = vpack.c.bf16 %v474_v29, %v470_v25  ;;  %v1446_v32 = vpack.c.bf16 %v634_v30, %v630_v26 }
 0x126   :  { %v476_v33 = vpop.f32.mrf.mxu0  ;;  %v636_v34 = vpop.f32.mrf.mxu1 }
 0x127   :  { %1506 = vst [vmem:[#allocation7 + $0x20] sm:$0xff] %v1366_v31   ;;  %1522 = vst [vmem:[#allocation7 + $0xa0] sm:$0xff] %v1446_v32  }
 0x128   :  { %1078 = vst [vmem:[#allocation8 + $0x48] sm:$0xff] %v476_v33  ;;  %1110 = vst [vmem:[#allocation8 + $0x148] sm:$0xff] %v636_v34  ;;  %v480_v35 = vpop.f32.mrf.mxu0  ;;  %v640_v36 = vpop.f32.mrf.mxu1 }
 0x12a   :  { %v482_v37 = vpop.f32.mrf.mxu0  ;;  %v642_v38 = vpop.f32.mrf.mxu1 }
 0x12b   :  { %1079 = vst [vmem:[#allocation8 + $0x50] sm:$0xff] %v482_v37  ;;  %1111 = vst [vmem:[#allocation8 + $0x150] sm:$0xff] %v642_v38 }
 0x12c   :  { %v484_v39 = vpop.f32.mrf.mxu0  ;;  %v644_v40 = vpop.f32.mrf.mxu1 }
 0x12d   :  { %v1371_v41 = vpack.c.bf16 %v484_v39, %v480_v35  ;;  %v1451_v42 = vpack.c.bf16 %v644_v40, %v640_v36 }
 0x12e   :  { %v486_v43 = vpop.f32.mrf.mxu0  ;;  %v646_v44 = vpop.f32.mrf.mxu1 }
 0x12f   :  { %1507 = vst [vmem:[#allocation7 + $0x28] sm:$0xff] %v1371_v41   ;;  %1523 = vst [vmem:[#allocation7 + $0xa8] sm:$0xff] %v1451_v42  }
 0x130   :  { %1080 = vst [vmem:[#allocation8 + $0x58] sm:$0xff] %v486_v43  ;;  %1112 = vst [vmem:[#allocation8 + $0x158] sm:$0xff] %v646_v44  ;;  %v490_v45 = vpop.f32.mrf.mxu0  ;;  %v650_v46 = vpop.f32.mrf.mxu1 }
 0x132   :  { %v492_v47 = vpop.f32.mrf.mxu0  ;;  %v652_v48 = vpop.f32.mrf.mxu1 }
 0x133   :  { %1081 = vst [vmem:[#allocation8 + $0x60] sm:$0xff] %v492_v47  ;;  %1113 = vst [vmem:[#allocation8 + $0x160] sm:$0xff] %v652_v48 }
 0x134   :  { %v494_v49 = vpop.f32.mrf.mxu0  ;;  %v654_v50 = vpop.f32.mrf.mxu1 }
 0x135   :  { %v1376_v51 = vpack.c.bf16 %v494_v49, %v490_v45  ;;  %v1456_v52 = vpack.c.bf16 %v654_v50, %v650_v46 }
 0x136   :  { %v496_v53 = vpop.f32.mrf.mxu0  ;;  %v656_v54 = vpop.f32.mrf.mxu1 }
 0x137   :  { %1508 = vst [vmem:[#allocation7 + $0x30] sm:$0xff] %v1376_v51   ;;  %1524 = vst [vmem:[#allocation7 + $0xb0] sm:$0xff] %v1456_v52  }
 0x138   :  { %1082 = vst [vmem:[#allocation8 + $0x68] sm:$0xff] %v496_v53  ;;  %1114 = vst [vmem:[#allocation8 + $0x168] sm:$0xff] %v656_v54  ;;  %v500_v55 = vpop.f32.mrf.mxu0  ;;  %v660_v56 = vpop.f32.mrf.mxu1 }
 0x13a   :  { %v502_v57 = vpop.f32.mrf.mxu0  ;;  %v662_v58 = vpop.f32.mrf.mxu1 }
 0x13b   :  { %1083 = vst [vmem:[#allocation8 + $0x70] sm:$0xff] %v502_v57  ;;  %1115 = vst [vmem:[#allocation8 + $0x170] sm:$0xff] %v662_v58 }
 0x13c   :  { %v504_v59 = vpop.f32.mrf.mxu0  ;;  %v664_v60 = vpop.f32.mrf.mxu1 }
 0x13d   :  { %v1381_v61 = vpack.c.bf16 %v504_v59, %v500_v55  ;;  %v1461_v62 = vpack.c.bf16 %v664_v60, %v660_v56 }
 0x13e   :  { %v506_v63 = vpop.f32.mrf.mxu0  ;;  %v666_v0 = vpop.f32.mrf.mxu1 }
 0x13f   :  { %1509 = vst [vmem:[#allocation7 + $0x38] sm:$0xff] %v1381_v61   ;;  %1525 = vst [vmem:[#allocation7 + $0xb8] sm:$0xff] %v1461_v62  }
 0x140   :  { %1084 = vst [vmem:[#allocation8 + $0x78] sm:$0xff] %v506_v63  ;;  %1116 = vst [vmem:[#allocation8 + $0x178] sm:$0xff] %v666_v0  ;;  %v510_v1 = vpop.f32.mrf.mxu0  ;;  %v670_v2 = vpop.f32.mrf.mxu1 }
 0x142   :  { %v512_v3 = vpop.f32.mrf.mxu0  ;;  %v672_v4 = vpop.f32.mrf.mxu1 }
 0x143   :  { %1085 = vst [vmem:[#allocation8 + $0x80] sm:$0xff] %v512_v3  ;;  %1117 = vst [vmem:[#allocation8 + $0x180] sm:$0xff] %v672_v4 }
 0x144   :  { %v514_v5 = vpop.f32.mrf.mxu0  ;;  %v674_v6 = vpop.f32.mrf.mxu1 }
 0x145   :  { %v1386_v7 = vpack.c.bf16 %v514_v5, %v510_v1  ;;  %v1466_v8 = vpack.c.bf16 %v674_v6, %v670_v2 }
 0x146   :  { %v516_v9 = vpop.f32.mrf.mxu0  ;;  %v676_v10 = vpop.f32.mrf.mxu1 }
 0x147   :  { %1510 = vst [vmem:[#allocation7 + $0x40] sm:$0xff] %v1386_v7   ;;  %1526 = vst [vmem:[#allocation7 + $0xc0] sm:$0xff] %v1466_v8  }
 0x148   :  { %1086 = vst [vmem:[#allocation8 + $0x88] sm:$0xff] %v516_v9  ;;  %1118 = vst [vmem:[#allocation8 + $0x188] sm:$0xff] %v676_v10  ;;  %v520_v11 = vpop.f32.mrf.mxu0  ;;  %v680_v12 = vpop.f32.mrf.mxu1 }
 0x14a   :  { %v522_v13 = vpop.f32.mrf.mxu0  ;;  %v682_v14 = vpop.f32.mrf.mxu1 }
 0x14b   :  { %1087 = vst [vmem:[#allocation8 + $0x90] sm:$0xff] %v522_v13  ;;  %1119 = vst [vmem:[#allocation8 + $0x190] sm:$0xff] %v682_v14 }
 0x14c   :  { %v524_v15 = vpop.f32.mrf.mxu0  ;;  %v684_v16 = vpop.f32.mrf.mxu1 }
 0x14d   :  { %v1391_v17 = vpack.c.bf16 %v524_v15, %v520_v11  ;;  %v1471_v18 = vpack.c.bf16 %v684_v16, %v680_v12 }
 0x14e   :  { %v526_v19 = vpop.f32.mrf.mxu0  ;;  %v686_v20 = vpop.f32.mrf.mxu1 }
 0x14f   :  { %1511 = vst [vmem:[#allocation7 + $0x48] sm:$0xff] %v1391_v17   ;;  %1527 = vst [vmem:[#allocation7 + $0xc8] sm:$0xff] %v1471_v18  }
 0x150   :  { %1088 = vst [vmem:[#allocation8 + $0x98] sm:$0xff] %v526_v19  ;;  %1120 = vst [vmem:[#allocation8 + $0x198] sm:$0xff] %v686_v20  ;;  %v530_v21 = vpop.f32.mrf.mxu0  ;;  %v690_v22 = vpop.f32.mrf.mxu1 }
 0x152   :  { %v532_v23 = vpop.f32.mrf.mxu0  ;;  %v692_v24 = vpop.f32.mrf.mxu1 }
 0x153   :  { %1089 = vst [vmem:[#allocation8 + $0xa0] sm:$0xff] %v532_v23  ;;  %1121 = vst [vmem:[#allocation8 + $0x1a0] sm:$0xff] %v692_v24 }
 0x154   :  { %v534_v25 = vpop.f32.mrf.mxu0  ;;  %v694_v26 = vpop.f32.mrf.mxu1 }
 0x155   :  { %v1396_v27 = vpack.c.bf16 %v534_v25, %v530_v21  ;;  %v1476_v28 = vpack.c.bf16 %v694_v26, %v690_v22 }
 0x156   :  { %v536_v29 = vpop.f32.mrf.mxu0  ;;  %v696_v30 = vpop.f32.mrf.mxu1 }
 0x157   :  { %1512 = vst [vmem:[#allocation7 + $0x50] sm:$0xff] %v1396_v27   ;;  %1528 = vst [vmem:[#allocation7 + $0xd0] sm:$0xff] %v1476_v28  }
 0x158   :  { %1090 = vst [vmem:[#allocation8 + $0xa8] sm:$0xff] %v536_v29  ;;  %1122 = vst [vmem:[#allocation8 + $0x1a8] sm:$0xff] %v696_v30  ;;  %v540_v31 = vpop.f32.mrf.mxu0  ;;  %v700_v32 = vpop.f32.mrf.mxu1 }
 0x15a   :  { %v542_v33 = vpop.f32.mrf.mxu0  ;;  %v702_v34 = vpop.f32.mrf.mxu1 }
 0x15b   :  { %1091 = vst [vmem:[#allocation8 + $0xb0] sm:$0xff] %v542_v33  ;;  %1123 = vst [vmem:[#allocation8 + $0x1b0] sm:$0xff] %v702_v34 }
 0x15c   :  { %v544_v35 = vpop.f32.mrf.mxu0  ;;  %v704_v36 = vpop.f32.mrf.mxu1 }
 0x15d   :  { %v1401_v37 = vpack.c.bf16 %v544_v35, %v540_v31  ;;  %v1481_v38 = vpack.c.bf16 %v704_v36, %v700_v32 }
 0x15e   :  { %v546_v39 = vpop.f32.mrf.mxu0  ;;  %v706_v40 = vpop.f32.mrf.mxu1 }
 0x15f   :  { %1513 = vst [vmem:[#allocation7 + $0x58] sm:$0xff] %v1401_v37   ;;  %1529 = vst [vmem:[#allocation7 + $0xd8] sm:$0xff] %v1481_v38  }
 0x160   :  { %1092 = vst [vmem:[#allocation8 + $0xb8] sm:$0xff] %v546_v39  ;;  %1124 = vst [vmem:[#allocation8 + $0x1b8] sm:$0xff] %v706_v40  ;;  %v550_v41 = vpop.f32.mrf.mxu0  ;;  %v710_v42 = vpop.f32.mrf.mxu1 }
 0x162   :  { %v552_v43 = vpop.f32.mrf.mxu0  ;;  %v712_v44 = vpop.f32.mrf.mxu1 }
 0x163   :  { %1093 = vst [vmem:[#allocation8 + $0xc0] sm:$0xff] %v552_v43  ;;  %1125 = vst [vmem:[#allocation8 + $0x1c0] sm:$0xff] %v712_v44 }
 0x164   :  { %v554_v45 = vpop.f32.mrf.mxu0  ;;  %v714_v46 = vpop.f32.mrf.mxu1 }
 0x165   :  { %v1406_v47 = vpack.c.bf16 %v554_v45, %v550_v41  ;;  %v1486_v48 = vpack.c.bf16 %v714_v46, %v710_v42 }
 0x166   :  { %v556_v49 = vpop.f32.mrf.mxu0  ;;  %v716_v50 = vpop.f32.mrf.mxu1 }
 0x167   :  { %1514 = vst [vmem:[#allocation7 + $0x60] sm:$0xff] %v1406_v47   ;;  %1530 = vst [vmem:[#allocation7 + $0xe0] sm:$0xff] %v1486_v48  }
 0x168   :  { %1094 = vst [vmem:[#allocation8 + $0xc8] sm:$0xff] %v556_v49  ;;  %1126 = vst [vmem:[#allocation8 + $0x1c8] sm:$0xff] %v716_v50  ;;  %v560_v51 = vpop.f32.mrf.mxu0  ;;  %v720_v52 = vpop.f32.mrf.mxu1 }
 0x16a   :  { %v562_v53 = vpop.f32.mrf.mxu0  ;;  %v722_v54 = vpop.f32.mrf.mxu1 }
 0x16b   :  { %1095 = vst [vmem:[#allocation8 + $0xd0] sm:$0xff] %v562_v53  ;;  %1127 = vst [vmem:[#allocation8 + $0x1d0] sm:$0xff] %v722_v54 }
 0x16c   :  { %v564_v55 = vpop.f32.mrf.mxu0  ;;  %v724_v56 = vpop.f32.mrf.mxu1 }
 0x16d   :  { %v1411_v57 = vpack.c.bf16 %v564_v55, %v560_v51  ;;  %v1491_v58 = vpack.c.bf16 %v724_v56, %v720_v52 }
 0x16e   :  { %v566_v59 = vpop.f32.mrf.mxu0  ;;  %v726_v60 = vpop.f32.mrf.mxu1 }
 0x16f   :  { %1515 = vst [vmem:[#allocation7 + $0x68] sm:$0xff] %v1411_v57   ;;  %1531 = vst [vmem:[#allocation7 + $0xe8] sm:$0xff] %v1491_v58  }
 0x170   :  { %1096 = vst [vmem:[#allocation8 + $0xd8] sm:$0xff] %v566_v59  ;;  %1128 = vst [vmem:[#allocation8 + $0x1d8] sm:$0xff] %v726_v60  ;;  %v570_v61 = vpop.f32.mrf.mxu0  ;;  %v730_v62 = vpop.f32.mrf.mxu1 }
 0x172   :  { %v572_v63 = vpop.f32.mrf.mxu0  ;;  %v732_v0 = vpop.f32.mrf.mxu1 }
 0x173   :  { %1097 = vst [vmem:[#allocation8 + $0xe0] sm:$0xff] %v572_v63  ;;  %1129 = vst [vmem:[#allocation8 + $0x1e0] sm:$0xff] %v732_v0 }
 0x174   :  { %v574_v1 = vpop.f32.mrf.mxu0  ;;  %v734_v2 = vpop.f32.mrf.mxu1 }
 0x175   :  { %v1416_v3 = vpack.c.bf16 %v574_v1, %v570_v61  ;;  %v1496_v4 = vpack.c.bf16 %v734_v2, %v730_v62 }
 0x176   :  { %v576_v5 = vpop.f32.mrf.mxu0  ;;  %v736_v6 = vpop.f32.mrf.mxu1 }
 0x177   :  { %1516 = vst [vmem:[#allocation7 + $0x70] sm:$0xff] %v1416_v3   ;;  %1532 = vst [vmem:[#allocation7 + $0xf0] sm:$0xff] %v1496_v4  }
 0x178   :  { %1098 = vst [vmem:[#allocation8 + $0xe8] sm:$0xff] %v576_v5  ;;  %1130 = vst [vmem:[#allocation8 + $0x1e8] sm:$0xff] %v736_v6  ;;  %v580_v7 = vpop.f32.mrf.mxu0  ;;  %v740_v8 = vpop.f32.mrf.mxu1 }
 0x17a   :  { %v582_v9 = vpop.f32.mrf.mxu0  ;;  %v742_v10 = vpop.f32.mrf.mxu1 }
 0x17b   :  { %1099 = vst [vmem:[#allocation8 + $0xf0] sm:$0xff] %v582_v9  ;;  %1131 = vst [vmem:[#allocation8 + $0x1f0] sm:$0xff] %v742_v10 }
 0x17c   :  { %v584_v11 = vpop.f32.mrf.mxu0  ;;  %v744_v12 = vpop.f32.mrf.mxu1 }
 0x17d   :  { %v1421_v13 = vpack.c.bf16 %v584_v11, %v580_v7  ;;  %v1501_v14 = vpack.c.bf16 %v744_v12, %v740_v8 }
 0x17e   :  { %v586_v15 = vpop.f32.mrf.mxu0  ;;  %v746_v16 = vpop.f32.mrf.mxu1 }
 0x17f   :  { %1517 = vst [vmem:[#allocation7 + $0x78] sm:$0xff] %v1421_v13   ;;  %1533 = vst [vmem:[#allocation7 + $0xf8] sm:$0xff] %v1501_v14  }
 0x180   :  { %1100 = vst [vmem:[#allocation8 + $0xf8] sm:$0xff] %v586_v15  ;;  %1132 = vst [vmem:[#allocation8 + $0x1f8] sm:$0xff] %v746_v16 }
 0x181   :  { %1666 = shalt.err (!%p1663_p0)
}
 0x182   :  { %1144 = dma.vmem_to_hbm [thread:$0]  %s1139_s1, 4096, %s1790_s2, [#allocation4], %s1704_s15, %s1704_s15, %s1705_s16  }
 0x183   :  { %s1675_s4 = scalar_lea.vmem %s1151_s27, 8192  ;;  %p1680_p2 = scmp.lt.s32.totalorder %s1151_s27, %s1151_s27 }
 0x184   :  { %p1676_p1 = scmp.ne.s32.totalorder %s1151_s27, %s1675_s4  ;;  %p1681_p3 = scmp.lt.s32.totalorder %s1675_s4, %s1675_s4 }
 0x186   :  { %p1682_p4 = por %p1681_p3, %p1680_p2 }
 0x188   :  { %p1683_p5 = pnand %p1682_p4, %p1676_p1 }
 0x18a   :  { %1686 = shalt.err (!%p1683_p5)
}
 0x18b   :  { %1156 = dma.vmem_to_hbm [thread:$0]  %s1151_s27, 8192, %s1791_s3, [#allocation9], %s1707_s22, %s1707_s22, %s1708_s23  }
 0x18c   :  { %1699 = dma.done.wait [#allocation4], 4096  }
 0x18d   :  { %1700 = vsyncadd [#allocation4], 4294963200 }
 0x18e   :  { %1701 = dma.done.wait [#allocation9], 8192  }
 0x18f   :  { %1702 = vsyncadd [#allocation9], 4294959104 }
 0x190   :  { %1163 = vsyncpa [#allocation3], 1 }
 0x191   :  { %1164 = vsyncpa [#allocation6], 1 }
 0x192   :  { %1165 = vsyncpa [#allocation4], 1 }
 0x193   :  { %1166 = vsyncpa [#allocation9], 1 }

</bundles_post_ra>
